<compile_context>
chip_gen: v5e
topology: v5e:2x2
jax: 0.10.0
libtpu: 0.0.40
codegen_flags: <defaults>
</compile_context>

<pallas_src>
import jax
import jax.numpy as jnp
from jax.experimental import pallas as pl
from jax.experimental.pallas import tpu as pltpu


def _cdiv(a, b):
    return -(-a // b)


def _round_up(n, m):
    return _cdiv(n, m) * m


def _padded_vmem_bytes(shape, itemsize):
    """VMEM footprint of a 2-D buffer after sublane/lane padding."""
    r, c = shape
    return _round_up(max(r, 1), 8) * _round_up(max(c, 1), 128) * itemsize


_HEADROOM = 8 << 20  # compiler scratch, semaphores, misc.


def _vmem_capacity_bytes():
    """Physical VMEM of the current chip; conservative fallback if the query fails."""
    try:
        cap = int(pltpu.get_tpu_info().vmem_capacity_bytes)
        if cap > 0:
            return cap
    except Exception:
        pass
    return 64 << 20  # v7x per-TensorCore VMEM (smallest of the supported generations)


# --------------------------------------------------------------------------- kernels


def _mlp_small_kernel(x_ref, w1_ref, b1_ref, w2t_ref, b2_ref, o_ref):
    """f32 VPU/XLU path for tiny feature/output dims (no MXU, no HBM lane padding).

    x: (tb, F)   w1: (F, H)   b1: (1, H)   w2t: (O, H)   b2: (1, O)   out: (tb, O)
    """
    n_feature = x_ref.shape[1]
    n_output = w2t_ref.shape[0]
    x = x_ref[...]
    w1 = w1_ref[...]
    # Layer 1: h[b, j] = sum_f x[b, f] * w1[f, j] — static unroll over the tiny F;
    # each term is a lane/sublane broadcast multiply-add on the VPU.
    h = x[:, 0:1] * w1[0:1, :]
    for f in range(1, n_feature):
        h = h + x[:, f:f + 1] * w1[f:f + 1, :]
    h = jnp.maximum(h + b1_ref[...], 0.0)
    # Layer 2: y[b, o] = sum_j h[b, j] * w2t[o, j] — multiply + cross-lane reduction.
    w2t = w2t_ref[...]
    cols = [jnp.sum(h * w2t[o:o + 1, :], axis=-1, keepdims=True)
            for o in range(n_output)]
    y = cols[0] if n_output == 1 else jnp.concatenate(cols, axis=-1)
    o_ref[...] = (y + b2_ref[...]).astype(o_ref.dtype)


def _mlp_mxu_kernel(x_ref, w1_ref, b1_ref, w2_ref, b2_ref, o_ref):
    """Generic MXU path for large F/H/O: f32 accumulation, bias + ReLU on the VPU.

    x: (tb, F)   w1: (F, H)   b1: (1, H)   w2: (H, O)   b2: (1, O)   out: (tb, O)
    """
    h = jnp.dot(x_ref[...], w1_ref[...], preferred_element_type=jnp.float32)
    h = jnp.maximum(h + b1_ref[...], 0.0)
    y = jnp.dot(h.astype(w2_ref.dtype), w2_ref[...],
                preferred_element_type=jnp.float32)
    o_ref[...] = (y + b2_ref[...]).astype(o_ref.dtype)


# ----------------------------------------------------------------------------- module


class PallasNet:
    """Two-layer MLP (Linear -> ReLU -> Linear) as a Pallas TPU kernel.

    Weights use the (in, out) layout (transpose of torch.nn.Linear's (out, in)).
    All weight preparation happens once here, not per forward call.
    """

    def __init__(self, w1, b1, w2, b2, *, compute_dtype=jnp.float32,
                 max_untiled_rows=1024):
        w1 = jnp.asarray(w1, jnp.float32)
        w2 = jnp.asarray(w2, jnp.float32)
        self.n_feature, self.n_hidden = w1.shape
        h2, self.n_output = w2.shape
        assert h2 == self.n_hidden, "w1/w2 hidden dims disagree"
        b1 = jnp.asarray(b1, jnp.float32).reshape(1, self.n_hidden)
        b2 = jnp.asarray(b2, jnp.float32).reshape(1, self.n_output)
        self.max_untiled_rows = int(max_untiled_rows)

        # Tiny feature/output dims (the shapes the regression script actually uses):
        # skip the MXU and keep f32 so results match the torch module.
        self.small = (self.n_feature <= 8 and self.n_output <= 8
                      and self.n_hidden <= 1024)
        if self.small:
            self.kernel = _mlp_small_kernel
            self.x_dtype = jnp.dtype(jnp.float32)
            params = (w1, b1, w2.T, b2)          # w2 stored (O, H) for lane reductions
        else:
            self.kernel = _mlp_mxu_kernel
            self.x_dtype = jnp.dtype(compute_dtype)
            params = (w1.astype(self.x_dtype), b1, w2.astype(self.x_dtype), b2)
        # One-time weight preparation + device placement (nothing per forward call).
        self.params = tuple(jax.device_put(p) for p in params)

        # --- VMEM accounting (padded on-chip buffer sizes; HBM traffic stays narrow) --
        it = self.x_dtype.itemsize
        f_l = _round_up(self.n_feature, 128)
        h_l = _round_up(self.n_hidden, 128)
        o_l = _round_up(self.n_output, 128)
        # Resident weights/biases (the pipeline double-buffers them by default).
        self._weight_bytes = 2 * sum(
            _padded_vmem_bytes(p.shape, p.dtype.itemsize) for p in self.params)
        # Per batch row: double-buffered x/out tiles + f32 hidden + temporaries.
        self._row_bytes = 2 * f_l * it + 2 * o_l * 4 + h_l * 4 + (f_l + o_l) * 4
        self._cache = {}

    def __call__(self, x):
        batch = x.shape[0]
        fwd = self._cache.get(batch)
        if fwd is None:
            fwd = self._build_forward(batch)
            self._cache[batch] = fwd
        return fwd(jnp.asarray(x, self.x_dtype))

    def _build_forward(self, batch):
        n_f, n_o = self.n_feature, self.n_output
        params = self.params
        kernel = self.kernel

        cap = _vmem_capacity_bytes()
        budget = int(cap * 0.75)          # per-generation budget, not a fixed clamp
        avail = budget - self._weight_bytes - _HEADROOM
        if avail < 8 * self._row_bytes:
            # TODO(synk): add hidden/contraction-dim tiling for weights that do not fit
            # in VMEM alongside a minimal batch tile; not needed for this module.
            raise ValueError("weights too large for batch-only tiling on this chip")
        tb_max = max(8, (avail // self._row_bytes) // 8 * 8)

        if batch <= self.max_untiled_rows and batch <= tb_max:
            # Whole problem fits comfortably: grid-less call (no pipeline setup, no
            # double buffers, no batch padding / output slicing).
            need = self._weight_bytes // 2 + _round_up(batch, 8) * self._row_bytes
            vmem_limit = int(min(cap, max(2 * need + _HEADROOM, 32 << 20)))
            call = pl.pallas_call(
                kernel,
                out_shape=jax.ShapeDtypeStruct((batch, n_o), jnp.float32),
                in_specs=[pl.BlockSpec(memory_space=pltpu.MemorySpace.VMEM)] * 5,
                out_specs=pl.BlockSpec(memory_space=pltpu.MemorySpace.VMEM),
                compiler_params=pltpu.CompilerParams(vmem_limit_bytes=vmem_limit),
            )
            return lambda xc: call(xc, *params)

        # Batch-tiled path: grid over batch only.  Weights/biases use constant
        # index_maps so they are fetched once and stay resident across grid steps.
        bp = _round_up(batch, 8)
        # Target a few MiB of VMEM tile per step (amortizes the ~0.35us per-step
        # pipeline overhead), keep >= 2 steps so v7x's two TensorCores both get work,
        # and balance the steps so the last tile is nearly full (no round-up waste).
        tb_cap = max(1024, (4 << 20) // self._row_bytes)
        tb_cap = max(8, min(tb_cap, tb_max) // 8 * 8)
        n_steps = max(2, _cdiv(bp, tb_cap))
        tb = _round_up(_cdiv(bp, n_steps), 8)
        grid = _cdiv(bp, tb)
        bp = grid * tb

        need = self._weight_bytes + tb * self._row_bytes + _HEADROOM
        vmem_limit = int(min(cap, max(need, 32 << 20)))

        def _resident(p):
            return pl.BlockSpec(p.shape, lambda i: (0, 0))

        call = pl.pallas_call(
            kernel,
            out_shape=jax.ShapeDtypeStruct((bp, n_o), jnp.float32),
            grid=(grid,),
            in_specs=[
                pl.BlockSpec((tb, n_f), lambda i: (i, 0)),   # x tile (unpadded F)
                _resident(params[0]),                        # resident W1
                _resident(params[1]),                        # resident b1
                _resident(params[2]),                        # resident W2 (or W2^T)
                _resident(params[3]),                        # resident b2
            ],
            out_specs=pl.BlockSpec((tb, n_o), lambda i: (i, 0)),  # unpadded O
            compiler_params=pltpu.CompilerParams(
                dimension_semantics=("parallel",),
                vmem_limit_bytes=vmem_limit),
        )

        def fwd(xc):
            if bp != batch:
                xc = jnp.pad(xc, ((0, bp - batch), (0, 0)))
            return call(xc, *params)[:batch]
        return fwd


# ------------------------------------------------------------------------------ tests


def init_params(key, n_feature, n_hidden, n_output):
    """torch.nn.Linear default init: U(-1/sqrt(fan_in), 1/sqrt(fan_in)); (in, out) layout."""
    k1, k2, k3, k4 = jax.random.split(key, 4)
    bound1 = 1.0 / float(n_feature) ** 0.5
    bound2 = 1.0 / float(n_hidden) ** 0.5
    w1 = jax.random.uniform(k1, (n_feature, n_hidden), jnp.float32, -bound1, bound1)
    b1 = jax.random.uniform(k2, (1, n_hidden), jnp.float32, -bound1, bound1)
    w2 = jax.random.uniform(k3, (n_hidden, n_output), jnp.float32, -bound2, bound2)
    b2 = jax.random.uniform(k4, (1, n_output), jnp.float32, -bound2, bound2)
    return w1, b1, w2, b2


def reference_forward(x, w1, b1, w2, b2):
    """Pure-JAX f32 reference (HIGHEST matmul precision = true f32 accuracy on TPU)."""
    h = jnp.maximum(jnp.dot(x, w1, precision=jax.lax.Precision.HIGHEST) + b1, 0.0)
    return jnp.dot(h, w2, precision=jax.lax.Precision.HIGHEST) + b2


if __name__ == "__main__":
    # Shapes from the original regression script: 100 samples, F=1, H=10, O=1.
    B, F, H, O = 100, 1, 10, 1
    w1, b1, w2, b2 = init_params(jax.random.PRNGKey(0), F, H, O)
    x = jnp.linspace(-1.0, 1.0, B, dtype=jnp.float32).reshape(B, 1)

    net = PallasNet(w1, b1, w2, b2)
    out = jax.block_until_ready(net(x))
    ref = reference_forward(x, w1, b1, w2, b2)
    assert out.shape == (B, O)
    assert jnp.allclose(out, ref, atol=1e-4, rtol=1e-4), "small untiled path mismatch"

    # Batch-tiled small path (grid over batch, resident weights, padded/sliced batch).
    B2 = 1000
    x2 = jax.random.normal(jax.random.PRNGKey(1), (B2, F), jnp.float32)
    net2 = PallasNet(w1, b1, w2, b2, max_untiled_rows=128)
    out2 = jax.block_until_ready(net2(x2))
    ref2 = reference_forward(x2, w1, b1, w2, b2)
    assert out2.shape == (B2, O)
    assert jnp.allclose(out2, ref2, atol=1e-4, rtol=1e-4), "small tiled path mismatch"

    # Generic MXU path (larger dims, still unpadded in HBM, batch-tiled).
    F3, H3, O3, B3 = 64, 160, 24, 384
    w13, b13, w23, b23 = init_params(jax.random.PRNGKey(2), F3, H3, O3)
    x3 = jax.random.normal(jax.random.PRNGKey(3), (B3, F3), jnp.float32)
    net3 = PallasNet(w13, b13, w23, b23, max_untiled_rows=128)
    out3 = jax.block_until_ready(net3(x3))
    ref3 = reference_forward(x3, w13, b13, w23, b23)
    assert out3.shape == (B3, O3)
    assert jnp.allclose(out3, ref3, atol=5e-2, rtol=5e-2), "MXU path mismatch"

    print("KERNEL_OK")
</pallas_src>

<mosaic_0001>
module attributes {stable_mosaic.version = 11 : i64} {
  func.func @_mlp_small_kernel(%arg0: memref<100x1xf32, #tpu.memory_space<vmem>>, %arg1: memref<1x10xf32, #tpu.memory_space<vmem>>, %arg2: memref<1x10xf32, #tpu.memory_space<vmem>>, %arg3: memref<1x10xf32, #tpu.memory_space<vmem>>, %arg4: memref<1x1xf32, #tpu.memory_space<vmem>>, %arg5: memref<100x1xf32, #tpu.memory_space<vmem>>) attributes {dimension_semantics = [], scalar_prefetch = 0 : i64, scratch_operands = 0 : i64, tpu.core_type = #tpu.core_type<tc>} {
    %c0 = arith.constant 0 : index
    %c0_0 = arith.constant 0 : index
    %0 = vector.load %arg0[%c0, %c0_0] : memref<100x1xf32, #tpu.memory_space<vmem>>, vector<100x1xf32>
    %c0_1 = arith.constant 0 : index
    %c0_2 = arith.constant 0 : index
    %1 = vector.load %arg1[%c0_1, %c0_2] : memref<1x10xf32, #tpu.memory_space<vmem>>, vector<1x10xf32>
    %2 = vector.broadcast %0 : vector<100x1xf32> to vector<100x10xf32>
    %3 = vector.broadcast %1 : vector<1x10xf32> to vector<100x10xf32>
    %4 = arith.mulf %2, %3 : vector<100x10xf32>
    %c0_3 = arith.constant 0 : index
    %c0_4 = arith.constant 0 : index
    %5 = vector.load %arg2[%c0_3, %c0_4] : memref<1x10xf32, #tpu.memory_space<vmem>>, vector<1x10xf32>
    %6 = vector.broadcast %5 : vector<1x10xf32> to vector<100x10xf32>
    %7 = arith.addf %4, %6 : vector<100x10xf32>
    %cst = arith.constant 0.000000e+00 : f32
    %8 = vector.broadcast %cst : f32 to vector<100x10xf32>
    %9 = arith.maximumf %7, %8 : vector<100x10xf32>
    %c0_5 = arith.constant 0 : index
    %c0_6 = arith.constant 0 : index
    %10 = vector.load %arg3[%c0_5, %c0_6] : memref<1x10xf32, #tpu.memory_space<vmem>>, vector<1x10xf32>
    %11 = vector.broadcast %10 : vector<1x10xf32> to vector<100x10xf32>
    %12 = arith.mulf %9, %11 : vector<100x10xf32>
    %cst_7 = arith.constant dense<0.000000e+00> : vector<100xf32>
    %13 = vector.multi_reduction <add>, %12, %cst_7 [1] : vector<100x10xf32> to vector<100xf32>
    %14 = vector.shape_cast %13 : vector<100xf32> to vector<100x1xf32>
    %c0_8 = arith.constant 0 : index
    %c0_9 = arith.constant 0 : index
    %15 = vector.load %arg4[%c0_8, %c0_9] : memref<1x1xf32, #tpu.memory_space<vmem>>, vector<1x1xf32>
    %16 = vector.broadcast %15 : vector<1x1xf32> to vector<100x1xf32>
    %17 = arith.addf %14, %16 : vector<100x1xf32>
    %c0_10 = arith.constant 0 : index
    %c0_11 = arith.constant 0 : index
    %18 = vector.load %arg5[%c0_10, %c0_11] : memref<100x1xf32, #tpu.memory_space<vmem>>, vector<100x1xf32>
    tpu.vector_store %arg5[%c0_10, %c0_11], %17 {strides = array<i32>} : memref<100x1xf32, #tpu.memory_space<vmem>>, vector<100x1xf32>,
    return
  }
}

</mosaic_0001>

<bundles_post_ra>
// kernel: tpu_custom_call.1
= control target key start
LH: loop header
LB: loop body
LE: loop exit
PB: predicated region body
PF: predicated region fallthrough
CT: control target
= control target key end

     0   :  { %v249_v0 = vmov 0   ;;  %vm164_vm0 = vcmask 80896   ;;  %vm201_vm1 = vcmask 76800   ;;  %vm222_vm2 = vcmask 7168   ;;  %s448_s0 = inlined_call_operand.vmem [shape: f32[100,1], index: 0, kind: input, shape index: {}]   ;;  %s449_s1 = inlined_call_operand.vmem [shape: f32[1,10], index: 1, kind: input, shape index: {}]   ;;  %s450_s2 = inlined_call_operand.vmem [shape: f32[1,10], index: 2, kind: input, shape index: {}]   ;;  %s451_s3 = inlined_call_operand.vmem [shape: f32[1,10], index: 3, kind: input, shape index: {}]   ;;  %s452_s4 = inlined_call_operand.<no memory space> [shape: f32[1,1], index: 4, kind: input, shape index: {}]   ;;  %s453_s5 = inlined_call_operand.vmem [shape: f32[100,1], index: 5, kind: output, shape index: {}]  }
   0x1   :  { %243 = vset.pattern.permute.xlu1 %v249_v0  ;;  %242 = vset.pattern.permute.xlu0 %v249_v0  ;;  %v24_v1 = vld [vmem:[%s448_s0 + $0x10] sm:$0xff]  ;;  %v22_v2 = vld [vmem:[%s448_s0] sm:$0xff]  ;;  %v25_v4 = vld [vmem:[%s448_s0 + $0x18] sm:$0xff]  ;;  %v10_v58 = vstv %s452_s4  ;;  %vm235_vm3 = vcmask 3072  }
   0x2   :  { %48 = vperm.xlu1 %243, %v24_v1   ;;  %38 = vperm.xlu0 %242, %v22_v2   ;;  %v26_v3 = vld [vmem:[%s448_s0 + $0x20] sm:$0xff]  ;;  %v23_v5 = vld [vmem:[%s448_s0 + $0x8] sm:$0xff]  ;;  %v29_v7 = vld [vmem:[%s448_s0 + $0x38] sm:$0xff]  ;;  %11 = vst [vmem:[#allocation2] sm:$0x1] %v10_v58 }
   0x3   :  { %244 = vset.pattern.permute.xlu2 %v249_v0  ;;  %v27_v6 = vld [vmem:[%s448_s0 + $0x28] sm:$0xff]  ;;  %v28_v8 = vld [vmem:[%s448_s0 + $0x30] sm:$0xff]  ;;  %v30_v9 = vld [vmem:[%s448_s0 + $0x40] sm:$0xff] }
   0x4   :  { %58 = vperm.xlu2 %244, %v26_v3   ;;  %v32_v10 = vld [vmem:[%s448_s0 + $0x50] sm:$0xff]  ;;  %v31_v11 = vld [vmem:[%s448_s0 + $0x48] sm:$0xff]  ;;  %v33_v12 = vld [vmem:[%s448_s0 + $0x58] sm:$0xff] }
   0x5   :  { %v34_v13 = vld [vmem:[%s448_s0 + $0x60] sm:$0xf] }
   0x6   :  { %v322_v14 = vld [vmem:[%s449_s1] ss:$0 sm:$0xff] }
   0x7   :  { %v327_v16 = vld [vmem:[%s450_s2] ss:$0 sm:$0xff] }
   0x8   :  { %v346_v32 = vld [vmem:[%s451_s3] ss:$0 sm:$0xff] }
   0xa   :  { %53 = vperm.xlu1 %243, %v25_v4   ;;  %43 = vperm.xlu0 %242, %v23_v5  }
   0xc   :  { %63 = vperm.xlu2 %244, %v27_v6  }
  0x12   :  { %73 = vperm.xlu1 %243, %v29_v7   ;;  %68 = vperm.xlu0 %242, %v28_v8  }
  0x14   :  { %78 = vperm.xlu2 %244, %v30_v9  }
  0x1a   :  { %88 = vperm.xlu1 %243, %v32_v10   ;;  %83 = vperm.xlu0 %242, %v31_v11  }
  0x1c   :  { %93 = vperm.xlu2 %244, %v33_v12  }
  0x22   :  { %98 = vperm.xlu0 %242, %v34_v13  }
  0x5e   :  { %v59_v15 = vpop.permute.xlu2 %58 }
  0x5f   :  { %v108_v17 = vmul.f32 %v322_v14, %v59_v15 }
  0x61   :  { %v125_v18 = vadd.f32 %v327_v16, %v108_v17 }
  0x63   :  { %v138_v37 = vmax.f32 %v125_v18, 0.0 }
  0x65   :  { %v155_v48 = vmul.f32 %v346_v32, %v138_v37 }
  0x66   :  { %v64_v19 = vpop.permute.xlu2 %63 }
  0x67   :  { %v109_v20 = vmul.f32 %v322_v14, %v64_v19  ;;  %v177_v50 = vsel %vm164_vm0, %v155_v48, 0.0 }
  0x69   :  { %v333_v21 = vadd.f32 %v327_v16, %v109_v20 }
  0x6b   :  { %v139_v2 = vmax.f32 %v333_v21, 0.0 }
  0x6d   :  { %v156_v12 = vmul.f32 %v346_v32, %v139_v2 }
  0x6e   :  { %v79_v22 = vpop.permute.xlu2 %78 }
  0x6f   :  { %v112_v23 = vmul.f32 %v322_v14, %v79_v22  ;;  %v180_v20 = vsel %vm164_vm0, %v156_v12, 0.0 }
  0x71   :  { %v337_v24 = vadd.f32 %v327_v16, %v112_v23 }
  0x73   :  { %v142_v21 = vmax.f32 %v337_v24, 0.0 }
  0x74   :  { %v49_v25 = vpop.permute.xlu1 %48  ;;  %v39_v26 = vpop.permute.xlu0 %38 }
  0x75   :  { %v106_v27 = vmul.f32 %v322_v14, %v49_v25  ;;  %v104_v28 = vmul.f32 %v322_v14, %v39_v26 }
  0x76   :  { %v94_v29 = vpop.permute.xlu2 %93 }
  0x77   :  { %v123_v30 = vadd.f32 %v327_v16, %v106_v27  ;;  %v121_v31 = vadd.f32 %v327_v16, %v104_v28  ;;  %v115_v33 = vmul.f32 %v322_v14, %v94_v29  ;;  %v159_v28 = vmul.f32 %v346_v32, %v142_v21 }
  0x79   :  { %v136_v34 = vmax.f32 %v123_v30, 0.0  ;;  %v134_v35 = vmax.f32 %v121_v31, 0.0  ;;  %v350_v36 = vadd.f32 %v327_v16, %v115_v33  ;;  %v189_v24 = vsel %vm164_vm0, %v159_v28, 0.0 }
  0x7b   :  { %v151_v38 = vmul.f32 %v346_v32, %v134_v35  ;;  %v153_v39 = vmul.f32 %v346_v32, %v136_v34  ;;  %v145_v30 = vmax.f32 %v350_v36, 0.0 }
  0x7c   :  { %v54_v40 = vpop.permute.xlu1 %53  ;;  %v44_v41 = vpop.permute.xlu0 %43 }
  0x7d   :  { %v107_v42 = vmul.f32 %v322_v14, %v54_v40  ;;  %v105_v43 = vmul.f32 %v322_v14, %v44_v41  ;;  %v165_v44 = vsel %vm164_vm0, %v151_v38, 0.0  ;;  %v171_v45 = vsel %vm164_vm0, %v153_v39, 0.0 }
  0x7e   :  { %166 = vadd.xlane.f32.xlu1 %v165_v44  ;;  %172 = vadd.xlane.f32.xlu0 %v171_v45  ;;  %v162_v31 = vmul.f32 %v346_v32, %v145_v30 }
  0x7f   :  { %v124_v46 = vadd.f32 %v327_v16, %v107_v42  ;;  %v122_v47 = vadd.f32 %v327_v16, %v105_v43 }
  0x80   :  { %v198_v33 = vsel %vm164_vm0, %v162_v31, 0.0 }
  0x81   :  { %v135_v49 = vmax.f32 %v122_v47, 0.0  ;;  %v137_v52 = vmax.f32 %v124_v46, 0.0 }
  0x83   :  { %v152_v51 = vmul.f32 %v346_v32, %v135_v49  ;;  %v154_v61 = vmul.f32 %v346_v32, %v137_v52 }
  0x84   :  { %v74_v53 = vpop.permute.xlu1 %73  ;;  %v69_v54 = vpop.permute.xlu0 %68 }
  0x85   :  { %v111_v55 = vmul.f32 %v322_v14, %v74_v53  ;;  %v110_v56 = vmul.f32 %v322_v14, %v69_v54  ;;  %v168_v57 = vsel %vm164_vm0, %v152_v51, 0.0  ;;  %v174_v5 = vsel %vm164_vm0, %v154_v61, 0.0 }
  0x86   :  { %178 = vadd.xlane.f32.xlu1 %v177_v50  ;;  %169 = vadd.xlane.f32.xlu2 %v168_v57 }
  0x87   :  { %v128_v59 = vadd.f32 %v327_v16, %v111_v55  ;;  %v127_v60 = vadd.f32 %v327_v16, %v110_v56 }
  0x89   :  { %v141_v62 = vmax.f32 %v128_v59, 0.0  ;;  %v140_v63 = vmax.f32 %v127_v60, 0.0 }
  0x8b   :  { %v158_v0 = vmul.f32 %v346_v32, %v141_v62  ;;  %v157_v1 = vmul.f32 %v346_v32, %v140_v63 }
  0x8c   :  { %v89_v3 = vpop.permute.xlu1 %88  ;;  %v84_v4 = vpop.permute.xlu0 %83 }
  0x8d   :  { %v114_v6 = vmul.f32 %v322_v14, %v89_v3  ;;  %v113_v7 = vmul.f32 %v322_v14, %v84_v4  ;;  %v186_v8 = vsel %vm164_vm0, %v158_v0, 0.0  ;;  %v183_v9 = vsel %vm164_vm0, %v157_v1, 0.0 }
  0x8e   :  { %187 = vadd.xlane.f32.xlu1 %v186_v8  ;;  %175 = vadd.xlane.f32.xlu2 %v174_v5 }
  0x8f   :  { %v131_v10 = vadd.f32 %v327_v16, %v114_v6  ;;  %v130_v11 = vadd.f32 %v327_v16, %v113_v7  ;;  %184 = vadd.xlane.f32.xlu0 %v183_v9 }
  0x91   :  { %v144_v13 = vmax.f32 %v131_v10, 0.0  ;;  %v143_v15 = vmax.f32 %v130_v11, 0.0 }
  0x93   :  { %v161_v17 = vmul.f32 %v346_v32, %v144_v13  ;;  %v160_v18 = vmul.f32 %v346_v32, %v143_v15 }
  0x94   :  { %v99_v19 = vpop.permute.xlu0 %98 }
  0x95   :  { %v116_v22 = vmul.f32 %v322_v14, %v99_v19  ;;  %v195_v23 = vsel %vm164_vm0, %v161_v17, 0.0  ;;  %v192_v25 = vsel %vm164_vm0, %v160_v18, 0.0 }
  0x96   :  { %196 = vadd.xlane.f32.xlu1 %v195_v23  ;;  %181 = vadd.xlane.f32.xlu2 %v180_v20 }
  0x97   :  { %v133_v26 = vadd.f32 %v327_v16, %v116_v22  ;;  %193 = vadd.xlane.f32.xlu0 %v192_v25  ;;  %v248_v16 = vld [vmem:[#allocation2] ss:$0 sm:$0xff] }
  0x99   :  { %v146_v27 = vmax.f32 %v133_v26, 0.0 }
  0x9b   :  { %v163_v29 = vmul.f32 %v346_v32, %v146_v27 }
  0x9d   :  { %v202_v14 = vsel %vm201_vm1, %v163_v29, 0.0 }
  0x9e   :  { %190 = vadd.xlane.f32.xlu2 %v189_v24 }
  0x9f   :  { %203 = vadd.xlane.f32.xlu0 %v202_v14 }
  0xa6   :  { %199 = vadd.xlane.f32.xlu2 %v198_v33 }
  0xf1   :  { %v167_v34 = vpop.xlane.xlu1 %166  ;;  %v173_v35 = vpop.xlane.xlu0 %172 }
  0xf2   :  { %v209_v37 = vadd.f32 %v248_v16, %v167_v34  ;;  %v211_v38 = vadd.f32 %v248_v16, %v173_v35 }
  0xf4   :  { %223 = vst.msk [vmem:[%s453_s5] sm:$0xff] %vm222_vm2, %v209_v37 }
  0xf5   :  { %225 = vst.msk [vmem:[%s453_s5 + $0x10] sm:$0xff] %vm222_vm2, %v211_v38 }
  0xf9   :  { %v179_v32 = vpop.xlane.xlu1 %178  ;;  %v170_v36 = vpop.xlane.xlu2 %169 }
  0xfa   :  { %v213_v39 = vadd.f32 %v248_v16, %v179_v32  ;;  %v210_v40 = vadd.f32 %v248_v16, %v170_v36 }
  0xfc   :  { %227 = vst.msk [vmem:[%s453_s5 + $0x20] sm:$0xff] %vm222_vm2, %v213_v39 }
  0xfd   :  { %224 = vst.msk [vmem:[%s453_s5 + $0x8] sm:$0xff] %vm222_vm2, %v210_v40 }
 0x101   :  { %v188_v41 = vpop.xlane.xlu1 %187  ;;  %v176_v42 = vpop.xlane.xlu2 %175 }
 0x102   :  { %v216_v43 = vadd.f32 %v248_v16, %v188_v41  ;;  %v212_v44 = vadd.f32 %v248_v16, %v176_v42  ;;  %v185_v45 = vpop.xlane.xlu0 %184 }
 0x103   :  { %v215_v46 = vadd.f32 %v248_v16, %v185_v45 }
 0x104   :  { %230 = vst.msk [vmem:[%s453_s5 + $0x38] sm:$0xff] %vm222_vm2, %v216_v43 }
 0x105   :  { %226 = vst.msk [vmem:[%s453_s5 + $0x18] sm:$0xff] %vm222_vm2, %v212_v44 }
 0x106   :  { %229 = vst.msk [vmem:[%s453_s5 + $0x30] sm:$0xff] %vm222_vm2, %v215_v46 }
 0x109   :  { %v197_v47 = vpop.xlane.xlu1 %196  ;;  %v182_v48 = vpop.xlane.xlu2 %181 }
 0x10a   :  { %v219_v49 = vadd.f32 %v248_v16, %v197_v47  ;;  %v214_v50 = vadd.f32 %v248_v16, %v182_v48  ;;  %v194_v51 = vpop.xlane.xlu0 %193 }
 0x10b   :  { %v218_v52 = vadd.f32 %v248_v16, %v194_v51 }
 0x10c   :  { %233 = vst.msk [vmem:[%s453_s5 + $0x50] sm:$0xff] %vm222_vm2, %v219_v49 }
 0x10d   :  { %228 = vst.msk [vmem:[%s453_s5 + $0x28] sm:$0xff] %vm222_vm2, %v214_v50 }
 0x10e   :  { %232 = vst.msk [vmem:[%s453_s5 + $0x48] sm:$0xff] %vm222_vm2, %v218_v52 }
 0x111   :  { %v191_v53 = vpop.xlane.xlu2 %190 }
 0x112   :  { %v217_v54 = vadd.f32 %v248_v16, %v191_v53  ;;  %v204_v55 = vpop.xlane.xlu0 %203 }
 0x113   :  { %v221_v56 = vadd.f32 %v248_v16, %v204_v55 }
 0x114   :  { %231 = vst.msk [vmem:[%s453_s5 + $0x40] sm:$0xff] %vm222_vm2, %v217_v54 }
 0x115   :  { %236 = vst.msk [vmem:[%s453_s5 + $0x60] sm:$0xf] %vm235_vm3, %v221_v56 }
 0x119   :  { %v200_v57 = vpop.xlane.xlu2 %199 }
 0x11a   :  { %v220_v58 = vadd.f32 %v248_v16, %v200_v57 }
 0x11c   :  { %234 = vst.msk [vmem:[%s453_s5 + $0x58] sm:$0xff] %vm222_vm2, %v220_v58 }

</bundles_post_ra>
